<compile_context>
chip_gen: v7x
topology: tpu7x:2x2x1
jax: 0.10.0
libtpu: 0.0.40
codegen_flags: <defaults>
</compile_context>

<pallas_src>
import jax
import jax.numpy as jnp
from jax.experimental import pallas as pl
from jax.experimental.pallas import tpu as pltpu

_SQRT_2_OVER_PI = 0.7978845608028654  # sqrt(2/pi)


def _gelu_kernel(x_ref, o_ref):
    x = x_ref[...].astype(jnp.float32)
    inner = jnp.float32(_SQRT_2_OVER_PI) * x * (1.0 + jnp.float32(0.044715) * x * x)
    y = 0.5 * x * (1.0 + jnp.tanh(inner))
    o_ref[...] = y.astype(o_ref.dtype)


def _choose_tile_rows(rows: int, cols: int, elem_bytes: int,
                      target_block_bytes: int, min_steps: int = 8) -> int:
    """Rows per block: VMEM-budget sized, multiple of 8, >= min_steps grid steps."""
    if rows <= 8:
        return rows  # full-extent block (allowed even when < 8)
    tr = max(8, (target_block_bytes // (cols * elem_bytes)) // 8 * 8)
    tr = min(tr, (rows // 8) * 8)
    # Keep >= min_steps steps when possible: >= 4 steps/TC on v7x (2 TCs),
    # and enough steps on v5e/v6e for double-buffered overlap.
    if rows >= min_steps * 8:
        cap = max(8, (rows // min_steps) // 8 * 8)
        tr = min(tr, cap)
    return tr


def _run_tiled(x2: jax.Array, rows: int, cols: int, tr: int,
               out_dtype, elem_bytes: int) -> jax.Array:
    grid = pl.cdiv(rows, tr)
    block_bytes = tr * cols * elem_bytes
    # 2 double-buffered input blocks + 2 output blocks + margin; clamp to a
    # sane range (v5e default scoped VMEM is 16 MiB, v7x physical is 64 MiB).
    vmem_limit = min(max(4 * block_bytes + (4 << 20), 16 << 20), 48 << 20)
    n = rows * cols
    cost = pl.CostEstimate(flops=8 * n, transcendentals=n,
                           bytes_accessed=2 * n * elem_bytes)
    return pl.pallas_call(
        _gelu_kernel,
        out_shape=jax.ShapeDtypeStruct((rows, cols), out_dtype),
        grid_spec=pltpu.PrefetchScalarGridSpec(
            num_scalar_prefetch=0,
            grid=(grid,),
            in_specs=[pl.BlockSpec((tr, cols), lambda i: (i, 0))],
            out_specs=pl.BlockSpec((tr, cols), lambda i: (i, 0)),
        ),
        compiler_params=pltpu.CompilerParams(
            dimension_semantics=("parallel",),
            vmem_limit_bytes=vmem_limit,
        ),
        cost_estimate=cost,
    )(x2)


def gelu_pallas(x: jax.Array, *, target_block_bytes: int = 4 << 20) -> jax.Array:
    """Tanh-approx GELU matching the PyTorch module's formula."""
    orig_shape = x.shape
    orig_dtype = x.dtype
    n = x.size
    if n == 0:
        return x
    elem_bytes = jnp.dtype(orig_dtype).itemsize

    # Fast path: last dim already lane-dense -> free reshape view, no repack.
    if x.ndim >= 2 and 0 < orig_shape[-1] <= 8192 and orig_shape[-1] % 128 == 0:
        cols = orig_shape[-1]
        rows = n // cols
        tr = _choose_tile_rows(rows, cols, elem_bytes, target_block_bytes)
        out2 = _run_tiled(x.reshape(rows, cols), rows, cols, tr, orig_dtype, elem_bytes)
        return out2.reshape(orig_shape)

    # Padding-free repack: lane-dense cols that exactly divides n.
    for cols in (512, 384, 256, 128):
        if n % cols == 0:
            rows = n // cols
            tr = _choose_tile_rows(rows, cols, elem_bytes, target_block_bytes)
            out2 = _run_tiled(x.reshape(rows, cols), rows, cols, tr, orig_dtype, elem_bytes)
            return out2.reshape(orig_shape)

    # Last resort (ragged size): pad the tail. GELU(0) == 0, tail sliced off.
    cols = 512
    while cols > 128 and pl.cdiv(n, cols) < 16:
        cols //= 2
    rows = pl.cdiv(n, cols)
    tr = _choose_tile_rows(rows, cols, elem_bytes, target_block_bytes)
    padded = rows * cols
    flat = jnp.pad(x.reshape(-1), (0, padded - n))
    out2 = _run_tiled(flat.reshape(rows, cols), rows, cols, tr, orig_dtype, elem_bytes)
    return out2.reshape(-1)[:n].reshape(orig_shape)


def gelu_ref(x: jax.Array) -> jax.Array:
    x32 = x.astype(jnp.float32)
    c = jnp.float32(_SQRT_2_OVER_PI)
    return (0.5 * x32 * (1.0 + jnp.tanh(c * (x32 + 0.044715 * x32 ** 3)))).astype(x.dtype)


if __name__ == "__main__":
    key = jax.random.PRNGKey(0)
    k1, k2, k3 = jax.random.split(key, 3)

    # Primary test: small NCHW-style activation (exercises the divisor path).
    x = jax.random.normal(k1, (2, 4, 16, 16), dtype=jnp.float32)
    tests = [
        x,
        jax.random.normal(k2, (8, 256), dtype=jnp.float32),  # lane-dense fast path
        jax.random.normal(k3, (3, 5, 7), dtype=jnp.float32),  # ragged -> pad path
    ]

    for xi in tests:
        yi = gelu_pallas(xi)
        jax.block_until_ready(yi)
        assert yi.shape == xi.shape and yi.dtype == xi.dtype
        assert jnp.allclose(yi, gelu_ref(xi), atol=1e-5, rtol=1e-5), "mismatch vs reference"

    print("KERNEL_OK")
</pallas_src>

<mosaic_0001>
module attributes {stable_mosaic.version = 11 : i64} {
  func.func @_gelu_kernel(%arg0: i32, %arg1: memref<4x512xf32, #tpu.memory_space<vmem>>, %arg2: memref<4x512xf32, #tpu.memory_space<vmem>>) attributes {dimension_semantics = [#tpu.dimension_semantics<parallel>], iteration_bounds = array<i64: 1>, scalar_prefetch = 0 : i64, scratch_operands = 0 : i64, tpu.core_type = #tpu.core_type<tc>, window_params = [{transform_indices = @transform_0, window_bounds = array<i64: 4, 512>}, {transform_indices = @transform_1, window_bounds = array<i64: 4, 512>}]} {
    %c0 = arith.constant 0 : index
    %c0_0 = arith.constant 0 : index
    %0 = vector.load %arg1[%c0, %c0_0] : memref<4x512xf32, #tpu.memory_space<vmem>>, vector<4x512xf32>
    %cst = arith.constant 0.797884583 : f32
    %1 = vector.broadcast %cst : f32 to vector<4x512xf32>
    %2 = arith.mulf %1, %0 : vector<4x512xf32>
    %cst_1 = arith.constant 4.471500e-02 : f32
    %3 = vector.broadcast %cst_1 : f32 to vector<4x512xf32>
    %4 = arith.mulf %3, %0 : vector<4x512xf32>
    %5 = arith.mulf %4, %0 : vector<4x512xf32>
    %cst_2 = arith.constant 1.000000e+00 : f32
    %6 = vector.broadcast %cst_2 : f32 to vector<4x512xf32>
    %7 = arith.addf %6, %5 : vector<4x512xf32>
    %8 = arith.mulf %2, %7 : vector<4x512xf32>
    %cst_3 = arith.constant 5.000000e-01 : f32
    %9 = vector.broadcast %cst_3 : f32 to vector<4x512xf32>
    %10 = arith.mulf %9, %0 : vector<4x512xf32>
    %11 = math.tanh %8 : vector<4x512xf32>
    %cst_4 = arith.constant 1.000000e+00 : f32
    %12 = vector.broadcast %cst_4 : f32 to vector<4x512xf32>
    %13 = arith.addf %12, %11 : vector<4x512xf32>
    %14 = arith.mulf %10, %13 : vector<4x512xf32>
    %c0_5 = arith.constant 0 : index
    %c0_6 = arith.constant 0 : index
    %15 = vector.load %arg2[%c0_5, %c0_6] : memref<4x512xf32, #tpu.memory_space<vmem>>, vector<4x512xf32>
    tpu.vector_store %arg2[%c0_5, %c0_6], %14 {strides = array<i32>} : memref<4x512xf32, #tpu.memory_space<vmem>>, vector<4x512xf32>,
    return
  }
  func.func @transform_0(%arg0: i32) -> (i32, i32) {
    %c0_i32 = arith.constant 0 : i32
    %c0_i32_0 = arith.constant 0 : i32
    return %arg0, %c0_i32 : i32, i32
  }
  func.func @transform_1(%arg0: i32) -> (i32, i32) {
    %c0_i32 = arith.constant 0 : i32
    %c0_i32_0 = arith.constant 0 : i32
    return %arg0, %c0_i32 : i32, i32
  }
}

</mosaic_0001>

<bundles_post_ra>
// kernel: tpu_custom_call.1
= control target key start
LH: loop header
LB: loop body
LE: loop exit
PB: predicated region body
PF: predicated region fallthrough
CT: control target
= control target key end

     0   :  { %6 = vsyncpa [#allocation3], 0  ;;  %s148_s0 = inlined_call_operand.hbm [shape: f32[4,512], index: 0, kind: input, shape index: {}]   ;;  %s149_s1 = inlined_call_operand.hbm [shape: f32[4,512], index: 1, kind: output, shape index: {}]  }
   0x1   :  { %7 = vsyncpa [#allocation4], 0  ;;  %s112_s6 = smov [#allocation2]   ;;  %s64_s10 = scalar_lea.hbm %s148_s0, 256 }
   0x2   :  { %s14_s7 = sshll.u32 %s112_s6, 4  ;;  %p65_p0 = scmp.ne.s32.totalorder %s148_s0, %s64_s10  ;;  %s15_s7 = int_to_ptr.vmem [resolvable:$true] %s14_s7 }
   0x3   :  { %p68_p1 = scmp.lt.u32.totalorder %s64_s10, %s148_s0 }
   0x5   :  { %p70_p2 = pnand %p68_p1, %p65_p0 }
   0x7   :  { %73 = shalt.err (!%p70_p2)
}
   0x8   :  { %s74_s15 = scalar_lea.vmem %s15_s7, 256  ;;  %p79_p4 = scmp.lt.s32.totalorder %s15_s7, %s15_s7 }
   0x9   :  { %p75_p3 = scmp.ne.s32.totalorder %s15_s7, %s74_s15  ;;  %p80_p5 = scmp.lt.s32.totalorder %s74_s15, %s74_s15 }
   0xb   :  { %p81_p6 = por %p80_p5, %p79_p4 }
   0xd   :  { %p82_p7 = pnand %p81_p6, %p75_p3 }
   0xf   :  { %85 = shalt.err (!%p82_p7)
}
  0x10   :  { %17 = dma.hbm_to_vmem [thread:$0]  %s148_s0, 256, %s15_s7, [#allocation3]  }
  0x11   :  { %108 = dma.done.wait [#allocation3], 256  }
  0x12   :  { %109 = vsyncadd [#allocation3], 4294967040  ;;  %v21_v0 = vld [vmem:[#allocation2] sm:$0xff]  ;;  %v22_v1 = vld [vmem:[#allocation2 + $0x8] sm:$0xff]  ;;  %s113_s0 = smov [#allocation5]  }
  0x13   :  { %v25_v2 = vmul.f32 0.044715, %v21_v0  ;;  %v26_v3 = vmul.f32 0.044715, %v22_v1  ;;  %v23_v4 = vmul.f32 0.7978846, %v21_v0 }
  0x14   :  { %v24_v6 = vmul.f32 0.7978846, %v22_v1  ;;  %v33_v12 = vmul.f32 0.5, %v21_v0  ;;  %v34_v14 = vmul.f32 0.5, %v22_v1  ;;  %s49_s18 = sshll.u32 %s113_s0, 4  ;;  %s50_s18 = int_to_ptr.vmem [resolvable:$true] %s49_s18 }
  0x15   :  { %v27_v5 = vmul.f32 %v25_v2, %v21_v0  ;;  %v28_v7 = vmul.f32 %v26_v3, %v22_v1  ;;  %s86_s19 = scalar_lea.vmem %s50_s18, 256  ;;  %p91_p9 = scmp.lt.s32.totalorder %s50_s18, %s50_s18 }
  0x16   :  { %p87_p8 = scmp.ne.s32.totalorder %s50_s18, %s86_s19  ;;  %p92_p10 = scmp.lt.s32.totalorder %s86_s19, %s86_s19 }
  0x17   :  { %v29_v8 = vadd.f32 1.0, %v27_v5  ;;  %v30_v9 = vadd.f32 1.0, %v28_v7 }
  0x18   :  { %p93_p11 = por %p92_p10, %p91_p9 }
  0x19   :  { %v31_v10 = vmul.f32 %v29_v8, %v23_v4  ;;  %v32_v11 = vmul.f32 %v30_v9, %v24_v6 }
  0x1a   :  { %p94_p12 = pnand %p93_p11, %p87_p8 }
  0x1b   :  { %60 = vtanh.f32 %v31_v10 }
  0x1c   :  { %62 = vtanh.f32 %v32_v11 }
  0x25   :  { %v61_v13 = vpop.eup %60 }
  0x26   :  { %v63_v15 = vpop.eup %62  ;;  %v37_v16 = vadd.f32 1.0, %v61_v13 }
  0x27   :  { %v38_v17 = vadd.f32 1.0, %v63_v15 }
  0x28   :  { %v39_v18 = vmul.f32 %v37_v16, %v33_v12 }
  0x29   :  { %v40_v19 = vmul.f32 %v38_v17, %v34_v14 }
  0x2a   :  { %41 = vst [vmem:[#allocation5] sm:$0xff] %v39_v18 }
  0x2b   :  { %42 = vst [vmem:[#allocation5 + $0x8] sm:$0xff] %v40_v19 }
  0x2c   :  { %97 = shalt.err (!%p94_p12)
}
  0x2d   :  { %s98_s22 = scalar_lea.hbm %s149_s1, 256 }
  0x2e   :  { %p99_p13 = scmp.ne.s32.totalorder %s149_s1, %s98_s22  ;;  %p102_p0 = scmp.lt.u32.totalorder %s98_s22, %s149_s1 }
  0x30   :  { %p104_p1 = pnand %p102_p0, %p99_p13 }
  0x32   :  { %107 = shalt.err (!%p104_p1)
}
  0x33   :  { %52 = dma.vmem_to_hbm [thread:$0]  %s50_s18, 256, %s149_s1, [#allocation4]  }
  0x34   :  { %110 = dma.done.wait [#allocation4], 256  }
  0x35   :  { %111 = vsyncadd [#allocation4], 4294967040 }
  0x36   :  { %56 = vsyncpa [#allocation3], 1 }
  0x37   :  { %57 = vsyncpa [#allocation4], 1 }

</bundles_post_ra>
